<compile_context>
chip_gen: v7x
topology: tpu7x:2x2x1
jax: 0.10.0
libtpu: 0.0.40
codegen_flags: <defaults>
</compile_context>

<pallas_src>
import functools

import jax
import jax.numpy as jnp
from jax import lax
from jax.experimental import pallas as pl
from jax.experimental.pallas import tpu as pltpu


def _attn_kernel(a_ref, w_ref, y_ref, *, m, k, v):
    a = a_ref[...]                      # (m+1, d)   rows 0..m-1 = M, row m = x
    w = w_ref[...]                      # (d, k+v+k) columns = [Wk | Wv | Wq]

    # Single fused projection matmul (replaces 3 separate MXU fills/drains).
    # Every row of A is projected through every weight block; the slices below
    # select the (row, column) pairs the module actually needs.  All slices are
    # static: K/V start at row 0, q starts at row m (=8, sublane-aligned), and
    # all column cuts stay inside one 128-lane tile, so they are cheap
    # lane/sublane sub-selects, not copies.
    p = jnp.dot(a, w, preferred_element_type=jnp.float32)   # (m+1, k+v+k)

    K = p[:m, :k]                       # (m, k)  = M @ Wk
    V = p[:m, k:k + v]                  # (m, v)  = M @ Wv
    q = p[m:m + 1, k + v:]              # (1, k)  = x @ Wq

    # logits[1, m] = q · K^T, contracting the k axis of both operands directly.
    # (If Mosaic materializes a transpose of K here it is a single cheap XLU op
    # on an otherwise idle slot at these shapes.)
    logits = lax.dot_general(
        q, K,
        dimension_numbers=(((1,), (1,)), ((), ())),
        preferred_element_type=jnp.float32)                 # (1, m)

    # Numerically stable softmax over the memory axis.  Exact divide: weights
    # sum to 1 exactly and the extra VPU work is free at these shapes.
    logits = logits - jnp.max(logits, axis=-1, keepdims=True)
    e = jnp.exp(logits)
    weights = e / jnp.sum(e, axis=-1, keepdims=True)        # (1, m)

    # Attention output, written exactly once.
    y_ref[...] = jnp.dot(weights, V, preferred_element_type=jnp.float32)  # (1, v)


def attention_pallas(x, M, Wq, Wk, Wv):
    """x: (d,), M: (m, d), Wq/Wk: (d, k), Wv: (d, v) -> y: (v,)"""
    d = x.shape[0]
    m = M.shape[0]
    k = Wq.shape[1]
    v = Wv.shape[1]

    # Pack operands so the kernel needs only one projection matmul:
    #   A = [M; x]            (m+1, d)
    #   W = [Wk | Wv | Wq]    (d, k+v+k)
    A = jnp.concatenate([M, x.reshape(1, d)], axis=0)
    W = jnp.concatenate([Wk, Wv, Wq], axis=1)

    # Gridless call: the whole working set is a few KB and lives in VMEM for
    # the single invocation — no grid, no index_maps, no unused double buffers.
    y2d = pl.pallas_call(
        functools.partial(_attn_kernel, m=m, k=k, v=v),
        out_shape=jax.ShapeDtypeStruct((1, v), jnp.float32),
        in_specs=[
            pl.BlockSpec(memory_space=pltpu.MemorySpace.VMEM),   # A
            pl.BlockSpec(memory_space=pltpu.MemorySpace.VMEM),   # W
        ],
        out_specs=pl.BlockSpec(memory_space=pltpu.MemorySpace.VMEM),
    )(A, W)

    # TODO(synk): for real throughput this should batch many (x, M) pairs per
    # pallas_call (grid over a batch axis, weights resident) and pack heads /
    # batch along the lane axis to 128+ columns; kept single-query here to
    # match the module's forward signature exactly.
    return y2d.reshape(v)


def attention_reference(x, M, Wq, Wk, Wv):
    """Plain-JAX reference matching the PyTorch forward exactly."""
    q = jnp.einsum('d,dk->k', x, Wq)
    K = jnp.einsum('md,dk->mk', M, Wk)
    V = jnp.einsum('md,dv->mv', M, Wv)
    logits = jnp.einsum('k,mk->m', q, K)
    weights = jax.nn.softmax(logits, axis=0)
    y = jnp.einsum('m,mv->v', weights, V)
    return y


if __name__ == "__main__":
    # Small shapes consistent with the module: d=32, k=16, v=16, m=8.
    d, kdim, vdim, m = 32, 16, 16, 8

    key = jax.random.PRNGKey(0)
    kx, km, kq, kk, kv = jax.random.split(key, 5)

    # Inputs (mildly scaled so the softmax is not a pure argmax).
    x = 0.25 * jax.random.normal(kx, (d,), dtype=jnp.float32)
    M = 0.25 * jax.random.normal(km, (m, d), dtype=jnp.float32)

    # Parameters: randn, matching the module's __init__.
    Wq = jax.random.normal(kq, (d, kdim), dtype=jnp.float32)
    Wk = jax.random.normal(kk, (d, kdim), dtype=jnp.float32)
    Wv = jax.random.normal(kv, (d, vdim), dtype=jnp.float32)

    y = attention_pallas(x, M, Wq, Wk, Wv)
    y = jax.block_until_ready(y)

    y_ref = attention_reference(x, M, Wq, Wk, Wv)
    assert jnp.allclose(y, y_ref, atol=2e-3, rtol=2e-3), "mismatch vs reference"

    print("KERNEL_OK")
</pallas_src>

<mosaic_0001>
module attributes {stable_mosaic.version = 11 : i64} {
  func.func @_attn_kernel(%arg0: memref<9x32xf32, #tpu.memory_space<vmem>>, %arg1: memref<32x48xf32, #tpu.memory_space<vmem>>, %arg2: memref<1x16xf32, #tpu.memory_space<vmem>>) attributes {dimension_semantics = [], scalar_prefetch = 0 : i64, scratch_operands = 0 : i64, tpu.core_type = #tpu.core_type<tc>} {
    %c0 = arith.constant 0 : index
    %c0_0 = arith.constant 0 : index
    %0 = vector.load %arg0[%c0, %c0_0] : memref<9x32xf32, #tpu.memory_space<vmem>>, vector<9x32xf32>
    %c0_1 = arith.constant 0 : index
    %c0_2 = arith.constant 0 : index
    %1 = vector.load %arg1[%c0_1, %c0_2] : memref<32x48xf32, #tpu.memory_space<vmem>>, vector<32x48xf32>
    %cst = arith.constant dense<0.000000e+00> : vector<9x48xf32>
    %2 = tpu.matmul %0, %1, %cst {dimension_numbers = #tpu.dot_dimension_numbers<[1], [0], [0], [1], [0, 0, 1, 1], [], []>} : vector<9x32xf32>, vector<32x48xf32>, vector<9x48xf32> -> vector<9x48xf32>
    %3 = vector.extract_strided_slice %2 {offsets = [0, 0], sizes = [8, 16], strides = [1, 1]} : vector<9x48xf32> to vector<8x16xf32>
    %4 = vector.extract_strided_slice %2 {offsets = [0, 16], sizes = [8, 16], strides = [1, 1]} : vector<9x48xf32> to vector<8x16xf32>
    %5 = vector.extract_strided_slice %2 {offsets = [8, 32], sizes = [1, 16], strides = [1, 1]} : vector<9x48xf32> to vector<1x16xf32>
    %cst_3 = arith.constant dense<0.000000e+00> : vector<1x8xf32>
    %6 = tpu.matmul %5, %3, %cst_3 {dimension_numbers = #tpu.dot_dimension_numbers<[1], [1], [0], [0], [0, 0, 1, 0], [], []>} : vector<1x16xf32>, vector<8x16xf32>, vector<1x8xf32> -> vector<1x8xf32>
    %cst_4 = arith.constant dense<0xFF800000> : vector<1xf32>
    %7 = vector.multi_reduction <maximumf>, %6, %cst_4 [1] : vector<1x8xf32> to vector<1xf32>
    %8 = vector.shape_cast %7 : vector<1xf32> to vector<1x1xf32>
    %9 = vector.broadcast %8 : vector<1x1xf32> to vector<1x8xf32>
    %10 = arith.subf %6, %9 : vector<1x8xf32>
    %11 = math.exp %10 : vector<1x8xf32>
    %cst_5 = arith.constant dense<0.000000e+00> : vector<1xf32>
    %12 = vector.multi_reduction <add>, %11, %cst_5 [1] : vector<1x8xf32> to vector<1xf32>
    %13 = vector.shape_cast %12 : vector<1xf32> to vector<1x1xf32>
    %14 = vector.broadcast %13 : vector<1x1xf32> to vector<1x8xf32>
    %15 = arith.divf %11, %14 : vector<1x8xf32>
    %cst_6 = arith.constant dense<0.000000e+00> : vector<1x16xf32>
    %16 = tpu.matmul %15, %4, %cst_6 {dimension_numbers = #tpu.dot_dimension_numbers<[1], [0], [0], [1], [0, 0, 1, 1], [], []>} : vector<1x8xf32>, vector<8x16xf32>, vector<1x16xf32> -> vector<1x16xf32>
    %c0_7 = arith.constant 0 : index
    %c0_8 = arith.constant 0 : index
    %17 = vector.load %arg2[%c0_7, %c0_8] : memref<1x16xf32, #tpu.memory_space<vmem>>, vector<1x16xf32>
    tpu.vector_store %arg2[%c0_7, %c0_8], %16 {strides = array<i32>} : memref<1x16xf32, #tpu.memory_space<vmem>>, vector<1x16xf32>,
    return
  }
}

</mosaic_0001>

<bundles_post_ra>
// kernel: tpu_custom_call.1
= control target key start
LH: loop header
LB: loop body
LE: loop exit
PB: predicated region body
PF: predicated region fallthrough
CT: control target
= control target key end

     0   :  { %7 = vsyncpa [#allocation3], 0  ;;  %s503_s0 = inlined_call_operand.hbm [shape: f32[9,32], index: 0, kind: input, shape index: {}]   ;;  %s504_s1 = inlined_call_operand.hbm [shape: f32[32,48], index: 1, kind: input, shape index: {}]   ;;  %s505_s2 = inlined_call_operand.hbm [shape: f32[1,16], index: 2, kind: output, shape index: {}]  }
   0x1   :  { %8 = vsyncpa [#allocation6], 0 }
   0x2   :  { %9 = vsyncpa [#allocation4], 0  ;;  %s443_s9 = smov [#allocation2]   ;;  %s371_s13 = scalar_lea.hbm %s503_s0, 256 }
   0x3   :  { %s15_s10 = sshll.u32 %s443_s9, 4  ;;  %p372_p0 = scmp.ne.s32.totalorder %s503_s0, %s371_s13  ;;  %s16_s10 = int_to_ptr.vmem [resolvable:$true] %s15_s10 }
   0x4   :  { %p375_p1 = scmp.lt.u32.totalorder %s371_s13, %s503_s0 }
   0x6   :  { %p377_p2 = pnand %p375_p1, %p372_p0 }
   0x8   :  { %380 = shalt.err (!%p377_p2)
}
   0x9   :  { %s381_s18 = scalar_lea.vmem %s16_s10, 256  ;;  %p386_p4 = scmp.lt.s32.totalorder %s16_s10, %s16_s10 }
   0xa   :  { %p382_p3 = scmp.ne.s32.totalorder %s16_s10, %s381_s18  ;;  %p387_p5 = scmp.lt.s32.totalorder %s381_s18, %s381_s18 }
   0xc   :  { %p388_p6 = por %p387_p5, %p386_p4 }
   0xe   :  { %p389_p7 = pnand %p388_p6, %p382_p3 }
  0x10   :  { %392 = shalt.err (!%p389_p7)
}
  0x11   :  { %s444_s19 = smov 128   ;;  %s445_s20 = smov 8  }
  0x12   :  { %21 = dma.hbm_to_vmem [thread:$0]  %s503_s0, 256, %s16_s10, [#allocation3], %s444_s19, %s444_s19, %s445_s20  }
  0x13   :  { %s446_s23 = smov [#allocation5]   ;;  %s393_s27 = scalar_lea.hbm %s504_s1, 512 }
  0x14   :  { %s27_s24 = sshll.u32 %s446_s23, 4  ;;  %p394_p8 = scmp.ne.s32.totalorder %s504_s1, %s393_s27  ;;  %s28_s24 = int_to_ptr.vmem [resolvable:$true] %s27_s24 }
  0x15   :  { %p397_p9 = scmp.lt.u32.totalorder %s393_s27, %s504_s1 }
  0x17   :  { %p399_p10 = pnand %p397_p9, %p394_p8 }
  0x19   :  { %402 = shalt.err (!%p399_p10)
}
  0x1a   :  { %s403_s4 = scalar_lea.vmem %s28_s24, 512  ;;  %p408_p12 = scmp.lt.s32.totalorder %s28_s24, %s28_s24 }
  0x1b   :  { %p404_p11 = scmp.ne.s32.totalorder %s28_s24, %s403_s4  ;;  %p409_p13 = scmp.lt.s32.totalorder %s403_s4, %s403_s4 }
  0x1d   :  { %p410_p0 = por %p409_p13, %p408_p12 }
  0x1f   :  { %p411_p1 = pnand %p410_p0, %p404_p11 }
  0x21   :  { %414 = shalt.err (!%p411_p1)
}
  0x22   :  { %33 = dma.hbm_to_vmem [thread:$0]  %s504_s1, 512, %s28_s24, [#allocation6], %s444_s19, %s444_s19, %s445_s20  }
  0x23   :  { %437 = dma.done.wait [#allocation3], 256  }
  0x24   :  { %438 = vsyncadd [#allocation3], 4294967040 }
  0x25   :  { %439 = dma.done.wait [#allocation6], 512  }
  0x26   :  { %440 = vsyncadd [#allocation6], 4294966784  ;;  %vm46_vm0 = vcmask 261120   ;;  %v42_v0 = vld [vmem:[#allocation5] sm:$0xff]  ;;  %v43_v1 = vld [vmem:[#allocation5 + $0x8] sm:$0xff]  ;;  %v447_v8 = vmov 0.0  }
  0x27   :  { %v44_v2 = vld [vmem:[#allocation5 + $0x10] sm:$0xff]  ;;  %v350_v3 = vpack.c.bf16 %v43_v1, %v42_v0  ;;  %v45_v4 = vld [vmem:[#allocation5 + $0x18] sm:$0xff]  ;;  %340 = vmatprep.subr.mxu1 %v447_v8  ;;  %vm448_vm1 = vmmov 0   ;;  %vm131_vm2 = vcmask 130048   ;;  %s449_s1 = smov 96   ;;  %vm207_vm3 = vcmask 57344  }
  0x28   :  { %v40_v5 = vld [vmem:[#allocation2] sm:$0xff]  ;;  %v354_v6 = vpack.c.bf16 %v45_v4, %v44_v2  ;;  %v41_v7 = vld [vmem:[#allocation2 + $0x8] sm:$0x1]  ;;  %342 = vmatprep.mubr.msk.f32.mxu1 %vm448_vm1, %v447_v8  ;;  %s450_s6 = smov 112   ;;  %vm222_vm4 = vcmask 64512   ;;  %s451_s7 = smov [#allocation7]  }
  0x29   :  { %337 = vmatprep.mubr.msk.f32.mxu0 %vm46_vm0, %v40_v5  ;;  %351 = vmatprep.subr.bf16.mxu0 %v350_v3  ;;  %s304_s8 = sshll.u32 %s451_s7, 4  ;;  %vm296_vm5 = vcmask 122880   ;;  %s305_s8 = int_to_ptr.vmem [resolvable:$true] %s304_s8 }
  0x2a   :  { %353 = vmatpush3.bf16.msra.mxu0 %v350_v3  ;;  %s415_s9 = scalar_lea.vmem %s305_s8, 16  ;;  %s419_s10 = scalar_lea.vmem %s305_s8, 32 }
  0x2b   :  { %355 = vmatprep.subr.bf16.mxu0 %v354_v6  ;;  %p416_p2 = scmp.ne.s32.totalorder %s305_s8, %s415_s9  ;;  %p420_p3 = scmp.lt.s32.totalorder %s305_s8, %s305_s8 }
  0x2c   :  { %p421_p4 = scmp.lt.s32.totalorder %s419_s10, %s415_s9 }
  0x2e   :  { %357 = vmatpush3.bf16.msra.mxu0 %v354_v6  ;;  %p422_p5 = por %p421_p4, %p420_p3 }
  0x30   :  { %p423_p6 = pnand %p422_p5, %p416_p2 }
  0x31   :  { %338 = vmatmul.mubr.msk.f32.vlgmr.msra.gmra.mrb[0].mxu0 %vm46_vm0, %v41_v7 }
 0x104   :  { %v339_v9 = vpop.f32.mrb[0].mxu0 }
 0x105   :  { %129 = vrot.lane.b32.xlu0 %v339_v9, %s449_s1  ;;  %v119_v10 = vpop.f32.mrb[1].mxu0 }
 0x106   :  { %341 = vmatpush3.xpose.msk.msra.mxu1 %vm131_vm2, %v119_v10 }
 0x107   :  { %345 = vmatprep.subr.mxu1 %v447_v8 }
 0x177   :  { %v130_v11 = vpop.permute.xlu0 %129 }
 0x178   :  { %343 = vmatmul.mubr.msk.f32.vlgmr.msra.gmra.mrb[0].mxu1 %vm131_vm2, %v130_v11 }
 0x179   :  { %347 = vmatprep.mubr.msk.f32.mxu1 %vm448_vm1, %v447_v8 }
 0x24b   :  { %v203_v12 = vpop.f32.mrb[0].mxu1 }
 0x24c   :  { %v344_v13 = vpop.f32.mrb[1].mxu1  ;;  %v208_v14 = vsel %vm207_vm3, %v203_v12, -inf }
 0x24d   :  { %209 = vmax.xlane.f32.xlu0 %v208_v14 }
 0x2da   :  { %v210_v15 = vpop.xlane.xlu0 %209 }
 0x2db   :  { %v211_v16 = vsub.f32 %v203_v12, %v210_v15 }
 0x2dd   :  { %v212_v17 = vmul.f32 1.442695, %v211_v16 }
 0x2df   :  { %367 = vpow2.f32 %v212_v17 }
 0x2e9   :  { %v368_v18 = vpop.eup %367 }
 0x2ea   :  { %v214_v19 = vsel %vm207_vm3, %v368_v18, 0.0 }
 0x2eb   :  { %215 = vadd.xlane.f32.xlu1 %v214_v19 }
 0x2fc   :  { %219 = vrot.lane.b32.xlu1 %v119_v10, %s450_s6 }
 0x378   :  { %v216_v20 = vpop.xlane.xlu1 %215 }
 0x379   :  { %369 = vrcp.f32 %v216_v20 }
 0x37c   :  { %v220_v21 = vpop.permute.xlu1 %219 }
 0x37d   :  { %346 = vmatpush3.msra.mxu1 %v220_v21 }
 0x383   :  { %v370_v22 = vpop.eup %369 }
 0x384   :  { %v218_v23 = vmul.f32 %v370_v22, %v368_v18 }
 0x386   :  { %348 = vmatmul.mubr.msk.f32.vlgmr.msra.gmra.mrb[2].mxu1 %vm222_vm4, %v218_v23 }
 0x459   :  { %v292_v24 = vpop.f32.mrb[2].mxu1 }
 0x45a   :  { %v349_v25 = vpop.f32.mrb[3].mxu1  ;;  %297 = vst.msk [vmem:[#allocation7] sm:$0x1] %vm296_vm5, %v292_v24 }
 0x45b   :  { %426 = shalt.err (!%p423_p6)
}
 0x45c   :  { %s427_s13 = scalar_lea.hbm %s505_s2, 16 }
 0x45d   :  { %p428_p7 = scmp.ne.s32.totalorder %s505_s2, %s427_s13  ;;  %p431_p8 = scmp.lt.u32.totalorder %s427_s13, %s505_s2 }
 0x45f   :  { %p433_p9 = pnand %p431_p8, %p428_p7 }
 0x461   :  { %436 = shalt.err (!%p433_p9)
}
 0x462   :  { %307 = dma.vmem_to_hbm [thread:$0]  %s305_s8, 16, %s505_s2, [#allocation4]  }
 0x463   :  { %441 = dma.done.wait [#allocation4], 16  }
 0x464   :  { %442 = vsyncadd [#allocation4], 4294967280 }
 0x465   :  { %311 = vsyncpa [#allocation3], 1 }
 0x466   :  { %312 = vsyncpa [#allocation6], 1 }
 0x467   :  { %313 = vsyncpa [#allocation4], 1 }

</bundles_post_ra>
